<compile_context>
chip_gen: v7x
topology: tpu7x:2x2x1
jax: 0.10.0
libtpu: 0.0.40
codegen_flags: <defaults>
</compile_context>

<pallas_src>
import jax
import jax.numpy as jnp
from jax import lax
from jax.experimental import pallas as pl
from jax.experimental.pallas import tpu as pltpu


def _elu(v):
    # ELU(alpha=1): v if v > 0 else exp(v) - 1.  No clamp needed: the exp of a
    # large positive value only lives in the unselected branch (+inf, not NaN).
    return jnp.where(v > 0, v, jnp.exp(v) - 1.0)


def _mlp_kernel(x_ref,
                w1_ref, b1_ref, w2_ref, b2_ref, w3_ref, b3_ref,
                w4_ref, b4_ref, w5_ref, b5_ref,
                o_ref):
    # Layer 1 directly in the transposed ("batch on lanes") layout:
    #   h = W1 @ x^T  with  W1: (H, Din), x: (tb, Din)  ->  (H, tb)
    # (contract last dims of both operands - the standard NT matmul pattern).
    h = lax.dot_general(
        w1_ref[...], x_ref[...],
        dimension_numbers=(((1,), (1,)), ((), ())),
        preferred_element_type=jnp.float32)
    h = _elu(h + b1_ref[...])

    # Layers 2-4: plain (out, in) @ (in, tb) MXU matmuls; activations stay
    # lane-dense (the large batch-tile dimension maps to the 128-lane axis).
    for w_ref, b_ref in ((w2_ref, b2_ref), (w3_ref, b3_ref), (w4_ref, b4_ref)):
        h = jnp.dot(w_ref[...], h.astype(w_ref.dtype),
                    preferred_element_type=jnp.float32)
        h = _elu(h + b_ref[...])

    # Layer 5 (K = H/8, N = 1): VPU multiply + tiny sublane reduction instead
    # of a padded MXU pass; result is already the lane-dense (1, tb) row.
    q = jnp.sum(h * w5_ref[...], axis=0, keepdims=True) + b5_ref[...]

    o_ref[0] = q.astype(o_ref.dtype)


def _round_up(n, m):
    return ((n + m - 1) // m) * m


def network_forward(obs_and_action, params, *, block_b=4096, compute_dtype=None):
    """Forward pass of the 5-layer ELU MLP.

    obs_and_action: (B, Din).
    params: 5 pairs (W, b), W stored as (in_dim, out_dim), b as (1, out_dim)
            (same convention as the original code / init_params below).
    compute_dtype: optionally jnp.bfloat16 to halve HBM traffic for x / the
            layer 1-4 weights on bandwidth-bound batches (accumulation and ELU
            stay in float32).  Default None keeps the input dtype exactly.
    Returns (B, 1), matching the PyTorch module's output.
    """
    B, Din = obs_and_action.shape
    out_dtype = obs_and_action.dtype
    (w1, b1), (w2, b2), (w3, b3), (w4, b4), (w5, b5) = params

    # Weights transposed to (out, in) so the kernel computes (out,in)@(in,tb);
    # biases as (out, 1) columns (broadcast across the lane/batch axis) in f32.
    w1t, w2t, w3t, w4t = (jnp.asarray(w).T for w in (w1, w2, w3, w4))
    b1t, b2t, b3t, b4t, b5t = (
        jnp.asarray(b).reshape(-1, 1).astype(jnp.float32)
        for b in (b1, b2, b3, b4, b5))
    w5c = jnp.asarray(w5).reshape(-1, 1).astype(jnp.float32)   # (H/8, 1), VPU layer

    x_in = obs_and_action
    if compute_dtype is not None:
        x_in = x_in.astype(compute_dtype)
        w1t, w2t, w3t, w4t = (w.astype(compute_dtype)
                              for w in (w1t, w2t, w3t, w4t))

    # Batch tile: big tiles (few grid steps) for large batches, but always at
    # least 2 grid steps when B > 8 so both v7x TensorCores get work.
    if B <= 8:
        tb = B
    else:
        tb = min(block_b, _round_up(pl.cdiv(B, 2), 8))
    num_tiles = pl.cdiv(B, tb)

    def resident(arr):
        # Full-array block whose block index never changes: DMA'd once and
        # kept resident in VMEM across all batch tiles.
        return pl.BlockSpec(arr.shape, lambda i: (0, 0))

    # TODO(synk): if profiling on v7x still shows exposed input DMA, add
    # pipeline_mode=pl.Buffered(3) on the x BlockSpec.
    out = pl.pallas_call(
        _mlp_kernel,
        out_shape=jax.ShapeDtypeStruct((num_tiles, 1, tb), out_dtype),
        grid_spec=pltpu.PrefetchScalarGridSpec(
            num_scalar_prefetch=0,
            grid=(num_tiles,),
            in_specs=[
                pl.BlockSpec((tb, Din), lambda i: (i, 0)),
                resident(w1t), resident(b1t),
                resident(w2t), resident(b2t),
                resident(w3t), resident(b3t),
                resident(w4t), resident(b4t),
                resident(w5c), resident(b5t),
            ],
            out_specs=pl.BlockSpec((1, 1, tb), lambda i: (i, 0, 0)),
        ),
        compiler_params=pltpu.CompilerParams(
            dimension_semantics=("parallel",),
        ),
    )(x_in, w1t, b1t, w2t, b2t, w3t, b3t, w4t, b4t, w5c, b5t)

    # Lane-dense slab -> (B, 1); row-major order of (num_tiles, 1, tb) matches
    # batch order, tail padding (when B % tb != 0) is sliced off here.
    return out.reshape(num_tiles * tb)[:B].reshape(B, 1)


def init_params(key, obs_and_action_size, hidden_size_q):
    """Xavier-uniform weights (as in the torch module) + small uniform biases."""
    dims = [obs_and_action_size, hidden_size_q, hidden_size_q // 2,
            hidden_size_q // 4, hidden_size_q // 8, 1]
    params = []
    for i in range(5):
        key, wk, bk = jax.random.split(key, 3)
        fan_in, fan_out = dims[i], dims[i + 1]
        limit = float(jnp.sqrt(6.0 / (fan_in + fan_out)))
        w = jax.random.uniform(wk, (fan_in, fan_out), jnp.float32,
                               minval=-limit, maxval=limit)
        blim = 1.0 / float(jnp.sqrt(fan_in))
        b = jax.random.uniform(bk, (1, fan_out), jnp.float32,
                               minval=-blim, maxval=blim)
        params.append((w, b))
    return params


def network_forward_ref(x, params):
    """Pure-JAX reference of the same forward pass."""
    h = x.astype(jnp.float32)
    for i, (w, b) in enumerate(params):
        h = h @ w + b
        if i < 4:
            h = jnp.where(h > 0, h, jnp.exp(h) - 1.0)
    return h.astype(x.dtype)


if __name__ == "__main__":
    key = jax.random.PRNGKey(0)
    pkey, xkey = jax.random.split(key)

    batch = 8
    obs_and_action_size = 32
    hidden_size_q = 32   # layer widths: 32 -> 32 -> 16 -> 8 -> 4 -> 1

    params = init_params(pkey, obs_and_action_size, hidden_size_q)
    x = jax.random.normal(xkey, (batch, obs_and_action_size), dtype=jnp.float32)

    q = network_forward(x, params)
    jax.block_until_ready(q)

    ref = network_forward_ref(x, params)
    assert q.shape == (batch, 1)
    assert jnp.allclose(q, ref, atol=1e-5, rtol=1e-5)

    # Also exercise the multi-tile (grid >= 2) path once.
    xb = jax.random.normal(xkey, (40, obs_and_action_size), dtype=jnp.float32)
    qb = network_forward(xb, params)
    jax.block_until_ready(qb)
    assert qb.shape == (40, 1)
    assert jnp.allclose(qb, network_forward_ref(xb, params), atol=1e-5, rtol=1e-5)

    print("KERNEL_OK")
</pallas_src>

<mosaic_0001>
module attributes {stable_mosaic.version = 11 : i64} {
  func.func @_mlp_kernel(%arg0: i32, %arg1: memref<8x32xf32, #tpu.memory_space<vmem>>, %arg2: memref<32x32xf32, #tpu.memory_space<vmem>>, %arg3: memref<32x1xf32, #tpu.memory_space<vmem>>, %arg4: memref<16x32xf32, #tpu.memory_space<vmem>>, %arg5: memref<16x1xf32, #tpu.memory_space<vmem>>, %arg6: memref<8x16xf32, #tpu.memory_space<vmem>>, %arg7: memref<8x1xf32, #tpu.memory_space<vmem>>, %arg8: memref<4x8xf32, #tpu.memory_space<vmem>>, %arg9: memref<4x1xf32, #tpu.memory_space<vmem>>, %arg10: memref<4x1xf32, #tpu.memory_space<vmem>>, %arg11: memref<1x1xf32, #tpu.memory_space<vmem>>, %arg12: memref<1x1x8xf32, #tpu.memory_space<vmem>>) attributes {dimension_semantics = [#tpu.dimension_semantics<parallel>], iteration_bounds = array<i64: 1>, scalar_prefetch = 0 : i64, scratch_operands = 0 : i64, tpu.core_type = #tpu.core_type<tc>, window_params = [{transform_indices = @transform_0, window_bounds = array<i64: 8, 32>}, {pipeline_mode = #tpu.pipeline_mode<synchronous>, transform_indices = @transform_1, window_bounds = array<i64: 32, 32>}, {pipeline_mode = #tpu.pipeline_mode<synchronous>, transform_indices = @transform_2, window_bounds = array<i64: 32, 1>}, {pipeline_mode = #tpu.pipeline_mode<synchronous>, transform_indices = @transform_3, window_bounds = array<i64: 16, 32>}, {pipeline_mode = #tpu.pipeline_mode<synchronous>, transform_indices = @transform_4, window_bounds = array<i64: 16, 1>}, {pipeline_mode = #tpu.pipeline_mode<synchronous>, transform_indices = @transform_5, window_bounds = array<i64: 8, 16>}, {pipeline_mode = #tpu.pipeline_mode<synchronous>, transform_indices = @transform_6, window_bounds = array<i64: 8, 1>}, {pipeline_mode = #tpu.pipeline_mode<synchronous>, transform_indices = @transform_7, window_bounds = array<i64: 4, 8>}, {pipeline_mode = #tpu.pipeline_mode<synchronous>, transform_indices = @transform_8, window_bounds = array<i64: 4, 1>}, {pipeline_mode = #tpu.pipeline_mode<synchronous>, transform_indices = @transform_9, window_bounds = array<i64: 4, 1>}, {pipeline_mode = #tpu.pipeline_mode<synchronous>, transform_indices = @transform_10, window_bounds = array<i64: 1, 1>}, {transform_indices = @transform_11, window_bounds = array<i64: 1, 1, 8>}]} {
    %c0 = arith.constant 0 : index
    %c0_0 = arith.constant 0 : index
    %0 = vector.load %arg2[%c0, %c0_0] : memref<32x32xf32, #tpu.memory_space<vmem>>, vector<32x32xf32>
    %c0_1 = arith.constant 0 : index
    %c0_2 = arith.constant 0 : index
    %1 = vector.load %arg1[%c0_1, %c0_2] : memref<8x32xf32, #tpu.memory_space<vmem>>, vector<8x32xf32>
    %cst = arith.constant dense<0.000000e+00> : vector<32x8xf32>
    %2 = tpu.matmul %0, %1, %cst {dimension_numbers = #tpu.dot_dimension_numbers<[1], [1], [0], [0], [0, 0, 1, 0], [], []>} : vector<32x32xf32>, vector<8x32xf32>, vector<32x8xf32> -> vector<32x8xf32>
    %c0_3 = arith.constant 0 : index
    %c0_4 = arith.constant 0 : index
    %3 = vector.load %arg3[%c0_3, %c0_4] : memref<32x1xf32, #tpu.memory_space<vmem>>, vector<32x1xf32>
    %4 = vector.broadcast %3 : vector<32x1xf32> to vector<32x8xf32>
    %5 = arith.addf %2, %4 : vector<32x8xf32>
    %cst_5 = arith.constant 0.000000e+00 : f32
    %6 = vector.broadcast %cst_5 : f32 to vector<32x8xf32>
    %7 = arith.cmpf ogt, %5, %6 : vector<32x8xf32>
    %8 = math.exp %5 : vector<32x8xf32>
    %cst_6 = arith.constant 1.000000e+00 : f32
    %9 = vector.broadcast %cst_6 : f32 to vector<32x8xf32>
    %10 = arith.subf %8, %9 : vector<32x8xf32>
    %11 = arith.select %7, %5, %10 : vector<32x8xi1>, vector<32x8xf32>
    %c0_7 = arith.constant 0 : index
    %c0_8 = arith.constant 0 : index
    %12 = vector.load %arg4[%c0_7, %c0_8] : memref<16x32xf32, #tpu.memory_space<vmem>>, vector<16x32xf32>
    %cst_9 = arith.constant dense<0.000000e+00> : vector<16x8xf32>
    %13 = tpu.matmul %12, %11, %cst_9 {dimension_numbers = #tpu.dot_dimension_numbers<[1], [0], [0], [1], [0, 0, 1, 1], [], []>} : vector<16x32xf32>, vector<32x8xf32>, vector<16x8xf32> -> vector<16x8xf32>
    %c0_10 = arith.constant 0 : index
    %c0_11 = arith.constant 0 : index
    %14 = vector.load %arg5[%c0_10, %c0_11] : memref<16x1xf32, #tpu.memory_space<vmem>>, vector<16x1xf32>
    %15 = vector.broadcast %14 : vector<16x1xf32> to vector<16x8xf32>
    %16 = arith.addf %13, %15 : vector<16x8xf32>
    %cst_12 = arith.constant 0.000000e+00 : f32
    %17 = vector.broadcast %cst_12 : f32 to vector<16x8xf32>
    %18 = arith.cmpf ogt, %16, %17 : vector<16x8xf32>
    %19 = math.exp %16 : vector<16x8xf32>
    %cst_13 = arith.constant 1.000000e+00 : f32
    %20 = vector.broadcast %cst_13 : f32 to vector<16x8xf32>
    %21 = arith.subf %19, %20 : vector<16x8xf32>
    %22 = arith.select %18, %16, %21 : vector<16x8xi1>, vector<16x8xf32>
    %c0_14 = arith.constant 0 : index
    %c0_15 = arith.constant 0 : index
    %23 = vector.load %arg6[%c0_14, %c0_15] : memref<8x16xf32, #tpu.memory_space<vmem>>, vector<8x16xf32>
    %cst_16 = arith.constant dense<0.000000e+00> : vector<8x8xf32>
    %24 = tpu.matmul %23, %22, %cst_16 {dimension_numbers = #tpu.dot_dimension_numbers<[1], [0], [0], [1], [0, 0, 1, 1], [], []>} : vector<8x16xf32>, vector<16x8xf32>, vector<8x8xf32> -> vector<8x8xf32>
    %c0_17 = arith.constant 0 : index
    %c0_18 = arith.constant 0 : index
    %25 = vector.load %arg7[%c0_17, %c0_18] : memref<8x1xf32, #tpu.memory_space<vmem>>, vector<8x1xf32>
    %26 = vector.broadcast %25 : vector<8x1xf32> to vector<8x8xf32>
    %27 = arith.addf %24, %26 : vector<8x8xf32>
    %cst_19 = arith.constant 0.000000e+00 : f32
    %28 = vector.broadcast %cst_19 : f32 to vector<8x8xf32>
    %29 = arith.cmpf ogt, %27, %28 : vector<8x8xf32>
    %30 = math.exp %27 : vector<8x8xf32>
    %cst_20 = arith.constant 1.000000e+00 : f32
    %31 = vector.broadcast %cst_20 : f32 to vector<8x8xf32>
    %32 = arith.subf %30, %31 : vector<8x8xf32>
    %33 = arith.select %29, %27, %32 : vector<8x8xi1>, vector<8x8xf32>
    %c0_21 = arith.constant 0 : index
    %c0_22 = arith.constant 0 : index
    %34 = vector.load %arg8[%c0_21, %c0_22] : memref<4x8xf32, #tpu.memory_space<vmem>>, vector<4x8xf32>
    %cst_23 = arith.constant dense<0.000000e+00> : vector<4x8xf32>
    %35 = tpu.matmul %34, %33, %cst_23 {dimension_numbers = #tpu.dot_dimension_numbers<[1], [0], [0], [1], [0, 0, 1, 1], [], []>} : vector<4x8xf32>, vector<8x8xf32>, vector<4x8xf32> -> vector<4x8xf32>
    %c0_24 = arith.constant 0 : index
    %c0_25 = arith.constant 0 : index
    %36 = vector.load %arg9[%c0_24, %c0_25] : memref<4x1xf32, #tpu.memory_space<vmem>>, vector<4x1xf32>
    %37 = vector.broadcast %36 : vector<4x1xf32> to vector<4x8xf32>
    %38 = arith.addf %35, %37 : vector<4x8xf32>
    %cst_26 = arith.constant 0.000000e+00 : f32
    %39 = vector.broadcast %cst_26 : f32 to vector<4x8xf32>
    %40 = arith.cmpf ogt, %38, %39 : vector<4x8xf32>
    %41 = math.exp %38 : vector<4x8xf32>
    %cst_27 = arith.constant 1.000000e+00 : f32
    %42 = vector.broadcast %cst_27 : f32 to vector<4x8xf32>
    %43 = arith.subf %41, %42 : vector<4x8xf32>
    %44 = arith.select %40, %38, %43 : vector<4x8xi1>, vector<4x8xf32>
    %c0_28 = arith.constant 0 : index
    %c0_29 = arith.constant 0 : index
    %45 = vector.load %arg10[%c0_28, %c0_29] : memref<4x1xf32, #tpu.memory_space<vmem>>, vector<4x1xf32>
    %46 = vector.broadcast %45 : vector<4x1xf32> to vector<4x8xf32>
    %47 = arith.mulf %44, %46 : vector<4x8xf32>
    %cst_30 = arith.constant dense<0.000000e+00> : vector<8xf32>
    %48 = vector.multi_reduction <add>, %47, %cst_30 [0] : vector<4x8xf32> to vector<8xf32>
    %49 = vector.shape_cast %48 : vector<8xf32> to vector<1x8xf32>
    %c0_31 = arith.constant 0 : index
    %c0_32 = arith.constant 0 : index
    %50 = vector.load %arg11[%c0_31, %c0_32] : memref<1x1xf32, #tpu.memory_space<vmem>>, vector<1x1xf32>
    %51 = vector.broadcast %50 : vector<1x1xf32> to vector<1x8xf32>
    %52 = arith.addf %49, %51 : vector<1x8xf32>
    %c0_33 = arith.constant 0 : index
    %c0_34 = arith.constant 0 : index
    %c0_35 = arith.constant 0 : index
    %53 = vector.load %arg12[%c0_33, %c0_34, %c0_35] : memref<1x1x8xf32, #tpu.memory_space<vmem>>, vector<1x1x8xf32>
    %54 = vector.shape_cast %53 : vector<1x1x8xf32> to vector<1x8xf32>
    %55 = vector.shape_cast %52 : vector<1x8xf32> to vector<1x1x8xf32>
    tpu.vector_store %arg12[%c0_33, %c0_34, %c0_35], %55 {strides = array<i32>} : memref<1x1x8xf32, #tpu.memory_space<vmem>>, vector<1x1x8xf32>,
    return
  }
  func.func @transform_0(%arg0: i32) -> (i32, i32) {
    %c0_i32 = arith.constant 0 : i32
    %c0_i32_0 = arith.constant 0 : i32
    return %arg0, %c0_i32 : i32, i32
  }
  func.func @transform_1(%arg0: i32) -> (i32, i32) {
    %c0_i32 = arith.constant 0 : i32
    %c0_i32_0 = arith.constant 0 : i32
    %c0_i32_1 = arith.constant 0 : i32
    return %c0_i32, %c0_i32_0 : i32, i32
  }
  func.func @transform_2(%arg0: i32) -> (i32, i32) {
    %c0_i32 = arith.constant 0 : i32
    %c0_i32_0 = arith.constant 0 : i32
    %c0_i32_1 = arith.constant 0 : i32
    return %c0_i32, %c0_i32_0 : i32, i32
  }
  func.func @transform_3(%arg0: i32) -> (i32, i32) {
    %c0_i32 = arith.constant 0 : i32
    %c0_i32_0 = arith.constant 0 : i32
    %c0_i32_1 = arith.constant 0 : i32
    return %c0_i32, %c0_i32_0 : i32, i32
  }
  func.func @transform_4(%arg0: i32) -> (i32, i32) {
    %c0_i32 = arith.constant 0 : i32
    %c0_i32_0 = arith.constant 0 : i32
    %c0_i32_1 = arith.constant 0 : i32
    return %c0_i32, %c0_i32_0 : i32, i32
  }
  func.func @transform_5(%arg0: i32) -> (i32, i32) {
    %c0_i32 = arith.constant 0 : i32
    %c0_i32_0 = arith.constant 0 : i32
    %c0_i32_1 = arith.constant 0 : i32
    return %c0_i32, %c0_i32_0 : i32, i32
  }
  func.func @transform_6(%arg0: i32) -> (i32, i32) {
    %c0_i32 = arith.constant 0 : i32
    %c0_i32_0 = arith.constant 0 : i32
    %c0_i32_1 = arith.constant 0 : i32
    return %c0_i32, %c0_i32_0 : i32, i32
  }
  func.func @transform_7(%arg0: i32) -> (i32, i32) {
    %c0_i32 = arith.constant 0 : i32
    %c0_i32_0 = arith.constant 0 : i32
    %c0_i32_1 = arith.constant 0 : i32
    return %c0_i32, %c0_i32_0 : i32, i32
  }
  func.func @transform_8(%arg0: i32) -> (i32, i32) {
    %c0_i32 = arith.constant 0 : i32
    %c0_i32_0 = arith.constant 0 : i32
    %c0_i32_1 = arith.constant 0 : i32
    return %c0_i32, %c0_i32_0 : i32, i32
  }
  func.func @transform_9(%arg0: i32) -> (i32, i32) {
    %c0_i32 = arith.constant 0 : i32
    %c0_i32_0 = arith.constant 0 : i32
    %c0_i32_1 = arith.constant 0 : i32
    return %c0_i32, %c0_i32_0 : i32, i32
  }
  func.func @transform_10(%arg0: i32) -> (i32, i32) {
    %c0_i32 = arith.constant 0 : i32
    %c0_i32_0 = arith.constant 0 : i32
    %c0_i32_1 = arith.constant 0 : i32
    return %c0_i32, %c0_i32_0 : i32, i32
  }
  func.func @transform_11(%arg0: i32) -> (i32, i32, i32) {
    %c0_i32 = arith.constant 0 : i32
    %c0_i32_0 = arith.constant 0 : i32
    %c0_i32_1 = arith.constant 0 : i32
    return %arg0, %c0_i32, %c0_i32_0 : i32, i32, i32
  }
}

</mosaic_0001>

<bundles_post_ra>
// kernel: tpu_custom_call.1
= control target key start
LH: loop header
LB: loop body
LE: loop exit
PB: predicated region body
PF: predicated region fallthrough
CT: control target
= control target key end

     0   :  { %s774_s0 = inlined_call_operand.vmem [shape: f32[8,32], index: 0, kind: input, shape index: {}]   ;;  %s775_s1 = inlined_call_operand.vmem [shape: f32[32,32], index: 1, kind: input, shape index: {}]   ;;  %s776_s2 = inlined_call_operand.vmem [shape: f32[32,1], index: 2, kind: input, shape index: {}]   ;;  %s777_s3 = inlined_call_operand.vmem [shape: f32[16,32], index: 3, kind: input, shape index: {}]   ;;  %s778_s4 = inlined_call_operand.vmem [shape: f32[16,1], index: 4, kind: input, shape index: {}]   ;;  %s779_s5 = inlined_call_operand.vmem [shape: f32[8,16], index: 5, kind: input, shape index: {}]   ;;  %s780_s6 = inlined_call_operand.vmem [shape: f32[8,1], index: 6, kind: input, shape index: {}]   ;;  %s781_s7 = inlined_call_operand.vmem [shape: f32[4,8], index: 7, kind: input, shape index: {}]   ;;  %s782_s8 = inlined_call_operand.vmem [shape: f32[4,1], index: 8, kind: input, shape index: {}]   ;;  %s783_s9 = inlined_call_operand.vmem [shape: f32[4,1], index: 9, kind: input, shape index: {}]   ;;  %s784_s10 = inlined_call_operand.<no memory space> [shape: f32[1,1], index: 10, kind: input, shape index: {}]   ;;  %s785_s11 = inlined_call_operand.hbm [shape: f32[1,1,8], index: 11, kind: output, shape index: {}]  }
   0x1   :  { %v16_v0 = vstv %s784_s10 }
   0x2   :  { %17 = vst [vmem:[#allocation2] sm:$0x1] %v16_v0 }
   0x3   :  { %v45_v1 = vld [vmem:[%s774_s0] sm:$0xff]  ;;  %vm70_vm0 = vcmask 261120   ;;  %v42_v4 = vld [vmem:[%s775_s1 + $0x8] sm:$0xff]  ;;  %v632_v5 = vmov 0   ;;  %v48_v6 = vld [vmem:[%s776_s2 + $0x10] sm:$0xff] }
   0x4   :  { %v41_v2 = vld [vmem:[%s775_s1] sm:$0xff]  ;;  %543 = vmatprep.subr.msk.mxu0 %vm70_vm0, %v45_v1  ;;  %590 = vset.pattern.permute.xlu0 %v632_v5  ;;  %v43_v7 = vld [vmem:[%s775_s1 + $0x10] sm:$0xff]  ;;  %v47_v8 = vld [vmem:[%s776_s2 + $0x8] sm:$0xff] }
   0x5   :  { %545 = vmatprep.mubr.msk.f32.mxu0 %vm70_vm0, %v41_v2  ;;  %v46_v3 = vld [vmem:[%s776_s2] sm:$0xff]  ;;  %544 = vmatpush3.xpose.msk.msra.mxu0 %vm70_vm0, %v45_v1  ;;  %v49_v9 = vld [vmem:[%s776_s2 + $0x18] sm:$0xff] }
   0x6   :  { %52 = vperm.xlu0 %590, %v46_v3   ;;  %591 = vset.pattern.permute.xlu1 %v632_v5 }
   0x7   :  { %62 = vperm.xlu1 %591, %v48_v6  }
   0x8   :  { %546 = vmatmul.mubr.msk.f32.vlgmr.msra.gmra.mrb[0].mxu0 %vm70_vm0, %v42_v4 }
   0x9   :  { %18 = vsyncpa [#allocation4], 0  ;;  %548 = vmatprep.mubr.msk.f32.mxu0 %vm70_vm0, %v43_v7  ;;  %v44_v10 = vld [vmem:[%s775_s1 + $0x18] sm:$0xff]  ;;  %v193_v11 = vld [vmem:[%s778_s4] sm:$0xff]  ;;  %v633_v49 = vmov 0.0|0.0   ;;  %vm634_vm5 = vmmov 0  }
   0xa   :  { %57 = vperm.xlu0 %590, %v47_v8   ;;  %v194_v12 = vld [vmem:[%s778_s4 + $0x8] sm:$0xff]  ;;  %v297_v13 = vld [vmem:[%s780_s6] sm:$0xff]  ;;  %582 = vmatprep.subr.bf16.mxu0 %v633_v49  ;;  %v635_v50 = vmov 0.0   ;;  %vm303_vm8 = vcmask 130048   ;;  %vm389_vm10 = vcmask 64512   ;;  %vm475_vm12 = vcmask 60416  }
   0xb   :  { %67 = vperm.xlu1 %591, %v49_v9   ;;  %v383_v14 = vld [vmem:[%s782_s8] sm:$0xf]  ;;  %v192_v48 = vld [vmem:[%s777_s3 + $0x8] sm:$0xff]  ;;  %vm494_vm13 = vcmask 57344  }
   0xc   :  { %549 = vmatmul.mubr.msk.f32.gmra.mrb[2].mxu0 %vm70_vm0, %v44_v10  ;;  %v468_v15 = vld [vmem:[%s783_s9] sm:$0xf] }
   0xd   :  { %v483_v16 = vld [vmem:[#allocation2] sm:$0x1]  ;;  %566 = vmatprep.mubr.msk.f32.mxu0 %vm634_vm5, %v635_v50 }
   0xe   :  { %197 = vperm.xlu0 %590, %v193_v11   ;;  %v191_v17 = vld [vmem:[%s777_s3] sm:$0xff] }
   0xf   :  { %202 = vperm.xlu1 %591, %v194_v12   ;;  %559 = vmatprep.mubr.msk.f32.mxu1 %vm70_vm0, %v191_v17  ;;  %v296_v2 = vld [vmem:[%s779_s5] sm:$0xff]  ;;  %s636_s5 = smov [#allocation3]  }
  0x10   :  { %v382_v10 = vld [vmem:[%s781_s7] sm:$0xf]  ;;  %s502_s7 = sshll.u32 %s636_s5, 4  ;;  %s503_s7 = int_to_ptr.vmem [resolvable:$true] %s502_s7 }
  0x11   :  { %s608_s0 = scalar_lea.vmem %s503_s7, 16  ;;  %s612_s26 = scalar_lea.vmem %s503_s7, 32 }
  0x12   :  { %300 = vperm.xlu0 %590, %v297_v13   ;;  %p609_p0 = scmp.ne.s32.totalorder %s503_s7, %s608_s0  ;;  %p613_p1 = scmp.lt.s32.totalorder %s503_s7, %s503_s7 }
  0x13   :  { %386 = vperm.xlu1 %591, %v383_v14   ;;  %p614_p2 = scmp.lt.s32.totalorder %s612_s26, %s608_s0 }
  0x15   :  { %p615_p3 = por %p614_p2, %p613_p1 }
  0x16   :  { %471 = vperm.xlu0 %590, %v468_v15  }
  0x17   :  { %486 = vperm.xlu1 %591, %v483_v16   ;;  %p616_p4 = pnand %p615_p3, %p609_p0 }
  0x85   :  { %v53_v18 = vpop.permute.xlu0 %52 }
  0x86   :  { %v63_v19 = vpop.permute.xlu1 %62 }
  0x89   :  { %v58_v20 = vpop.permute.xlu0 %57 }
  0x8a   :  { %v68_v26 = vpop.permute.xlu1 %67 }
  0x8d   :  { %v198_v53 = vpop.permute.xlu0 %197 }
  0x8e   :  { %v203_v51 = vpop.permute.xlu1 %202 }
  0x91   :  { %v301_v3 = vpop.permute.xlu0 %300 }
  0x92   :  { %v387_v12 = vpop.permute.xlu1 %386 }
  0xdb   :  { %v547_v21 = vpop.f32.mrb[0].mxu0 }
  0xdc   :  { %v158_v22 = vadd.f32 %v547_v21, %v58_v20  ;;  %v152_v23 = vpop.f32.mrb[1].mxu0 }
  0xdd   :  { %v153_v24 = vadd.f32 %v152_v23, %v53_v18 }
  0xde   :  { %v177_v25 = vmul.f32 1.442695, %v158_v22  ;;  %vm172_vm1 = vcmp.gt.f32.partialorder %v158_v22, 0.0 }
  0xdf   :  { %v175_v27 = vmul.f32 1.442695, %v153_v24  ;;  %v550_v28 = vpop.f32.mrb[2].mxu0  ;;  %vm171_vm2 = vcmp.gt.f32.partialorder %v153_v24, 0.0 }
  0xe0   :  { %592 = vpow2.f32 %v177_v25  ;;  %v168_v29 = vadd.f32 %v550_v28, %v68_v26  ;;  %v162_v30 = vpop.f32.mrb[3].mxu0 }
  0xe1   :  { %594 = vpow2.f32 %v175_v27  ;;  %v163_v31 = vadd.f32 %v162_v30, %v63_v19  ;;  %v472_v19 = vpop.permute.xlu0 %471  ;;  %v487_v30 = vpop.permute.xlu1 %486 }
  0xe2   :  { %v181_v32 = vmul.f32 1.442695, %v168_v29  ;;  %vm174_vm3 = vcmp.gt.f32.partialorder %v168_v29, 0.0 }
  0xe3   :  { %v179_v33 = vmul.f32 1.442695, %v163_v31  ;;  %vm173_vm4 = vcmp.gt.f32.partialorder %v163_v31, 0.0 }
  0xe4   :  { %596 = vpow2.f32 %v181_v32 }
  0xe5   :  { %598 = vpow2.f32 %v179_v33 }
  0xea   :  { %v593_v34 = vpop.eup %592 }
  0xeb   :  { %v595_v35 = vpop.eup %594  ;;  %v516_v36 = vadd.f32 -1.0, %v593_v34 }
  0xec   :  { %v515_v37 = vadd.f32 -1.0, %v595_v35 }
  0xed   :  { %v188_v38 = vsel %vm172_vm1, %v158_v22, %v516_v36  ;;  %v489_v22 = vlaneseq }
  0xee   :  { %v597_v39 = vpop.eup %596  ;;  %v187_v40 = vsel %vm171_vm2, %v153_v24, %v515_v37 }
  0xef   :  { %v599_v41 = vpop.eup %598  ;;  %v518_v42 = vadd.f32 -1.0, %v597_v39  ;;  %v574_v43 = vpack.c.bf16 %v188_v38, %v187_v40  ;;  %v490_v25 = vshrl.u32 %v489_v22, 7 }
  0xf0   :  { %v517_v44 = vadd.f32 -1.0, %v599_v41 }
  0xf1   :  { %575 = vmatprep.subr.bf16.mxu1 %v574_v43  ;;  %v190_v45 = vsel %vm174_vm3, %v168_v29, %v518_v42  ;;  %v491_v28 = vsub.s32 0, %v490_v25 }
  0xf2   :  { %577 = vmatpush3.bf16.msra.mxu1 %v574_v43  ;;  %v189_v46 = vsel %vm173_vm4, %v163_v31, %v517_v44 }
  0xf3   :  { %v578_v47 = vpack.c.bf16 %v190_v45, %v189_v46  ;;  %v492_v32 = vrot.slane %v487_v30, %v491_v28 }
  0xf5   :  { %579 = vmatprep.subr.bf16.mxu1 %v578_v47 }
  0xf6   :  { %581 = vmatpush3.bf16.msra.mxu1 %v578_v47 }
  0xf7   :  { %569 = vmatprep.subr.mxu1 %v635_v50 }
  0xf9   :  { %560 = vmatmul.mubr.msk.f32.vlgmr.msra.gmra.mrb[0].mxu1 %vm70_vm0, %v192_v48 }
  0xfa   :  { %571 = vmatprep.mubr.msk.f32.mxu1 %vm634_vm5, %v635_v50 }
 0x1cc   :  { %v561_v52 = vpop.f32.mrb[0].mxu1 }
 0x1cd   :  { %v283_v54 = vadd.f32 %v561_v52, %v203_v51  ;;  %v277_v55 = vpop.f32.mrb[1].mxu1 }
 0x1ce   :  { %v278_v56 = vadd.f32 %v277_v55, %v198_v53 }
 0x1cf   :  { %v290_v57 = vmul.f32 1.442695, %v283_v54  ;;  %vm287_vm6 = vcmp.gt.f32.partialorder %v283_v54, 0.0 }
 0x1d0   :  { %v288_v58 = vmul.f32 1.442695, %v278_v56  ;;  %vm286_vm7 = vcmp.gt.f32.partialorder %v278_v56, 0.0 }
 0x1d1   :  { %600 = vpow2.f32 %v290_v57 }
 0x1d2   :  { %602 = vpow2.f32 %v288_v58 }
 0x1db   :  { %v601_v59 = vpop.eup %600 }
 0x1dc   :  { %v603_v60 = vpop.eup %602  ;;  %v522_v61 = vadd.f32 -1.0, %v601_v59 }
 0x1dd   :  { %v521_v62 = vadd.f32 -1.0, %v603_v60 }
 0x1de   :  { %v295_v63 = vsel %vm287_vm6, %v283_v54, %v522_v61 }
 0x1df   :  { %v294_v0 = vsel %vm286_vm7, %v278_v56, %v521_v62 }
 0x1e0   :  { %v583_v1 = vpack.c.bf16 %v295_v63, %v294_v0 }
 0x1e2   :  { %584 = vmatpush3.bf16.msra.mxu0 %v583_v1 }
 0x1e5   :  { %567 = vmatmul.mubr.msk.f32.vlgmr.msra.gmra.mrb[4].mxu0 %vm303_vm8, %v296_v2 }
 0x2b8   :  { %v373_v4 = vpop.f32.mrb[4].mxu0 }
 0x2b9   :  { %v374_v5 = vadd.f32 %v373_v4, %v301_v3  ;;  %v568_v6 = vpop.f32.mrb[5].mxu0 }
 0x2bb   :  { %v378_v7 = vmul.f32 1.442695, %v374_v5  ;;  %vm377_vm9 = vcmp.gt.f32.partialorder %v374_v5, 0.0 }
 0x2bd   :  { %604 = vpow2.f32 %v378_v7 }
 0x2c7   :  { %v605_v8 = vpop.eup %604 }
 0x2c8   :  { %v524_v9 = vadd.f32 -1.0, %v605_v8 }
 0x2ca   :  { %v381_v11 = vsel %vm377_vm9, %v374_v5, %v524_v9 }
 0x2cb   :  { %570 = vmatpush3.msra.mxu1 %v381_v11 }
 0x2cc   :  { %572 = vmatmul.mubr.msk.f32.vlgmr.msra.gmra.mrb[2].mxu1 %vm389_vm10, %v382_v10 }
 0x39f   :  { %v459_v13 = vpop.f32.mrb[2].mxu1 }
 0x3a0   :  { %v460_v14 = vadd.f32 %v459_v13, %v387_v12  ;;  %v573_v15 = vpop.f32.mrb[3].mxu1 }
 0x3a2   :  { %v464_v16 = vmul.f32 1.442695, %v460_v14  ;;  %vm463_vm11 = vcmp.gt.f32.partialorder %v460_v14, 0.0 }
 0x3a4   :  { %606 = vpow2.f32 %v464_v16 }
 0x3ae   :  { %v607_v17 = vpop.eup %606 }
 0x3af   :  { %v526_v18 = vadd.f32 -1.0, %v607_v17 }
 0x3b1   :  { %v467_v20 = vsel %vm463_vm11, %v460_v14, %v526_v18 }
 0x3b2   :  { %v474_v21 = vmul.f32 %v472_v19, %v467_v20 }
 0x3b4   :  { %v476_v23 = vsel %vm475_vm12, %v474_v21, 0.0 }
 0x3b5   :  { %v477_v24 = vrot.slane %v476_v23, 4 }
 0x3b7   :  { %v478_v26 = vadd.f32 %v477_v24, %v476_v23 }
 0x3b9   :  { %v479_v27 = vrot.slane %v478_v26, 2 }
 0x3bb   :  { %v480_v29 = vadd.f32 %v479_v27, %v478_v26 }
 0x3bd   :  { %v481_v31 = vrot.slane %v480_v29, 1 }
 0x3bf   :  { %v482_v33 = vadd.f32 %v481_v31, %v480_v29 }
 0x3c1   :  { %v493_v34 = vadd.f32 %v492_v32, %v482_v33 }
 0x3c3   :  { %495 = vst.msk [vmem:[#allocation3] sm:$0x1] %vm494_vm13, %v493_v34 }
 0x3c4   :  { %619 = shalt.err (!%p616_p4)
}
 0x3c5   :  { %s620_s29 = scalar_lea.hbm %s785_s11, 16 }
 0x3c6   :  { %p621_p5 = scmp.ne.s32.totalorder %s785_s11, %s620_s29  ;;  %p624_p6 = scmp.lt.u32.totalorder %s620_s29, %s785_s11 }
 0x3c8   :  { %p626_p7 = pnand %p624_p6, %p621_p5 }
 0x3ca   :  { %629 = shalt.err (!%p626_p7)
}
 0x3cb   :  { %505 = dma.vmem_to_hbm [thread:$0]  %s503_s7, 16, %s785_s11, [#allocation4]  }
 0x3cc   :  { %630 = dma.done.wait [#allocation4], 16  }
 0x3cd   :  { %631 = vsyncadd [#allocation4], 4294967280 }
 0x3ce   :  { %509 = vsyncpa [#allocation4], 1 }

</bundles_post_ra>
